<compile_context>
chip_gen: v5e
topology: v5e:2x2
jax: 0.10.0
libtpu: 0.0.40
codegen_flags: <defaults>
</compile_context>

<pallas_src>
import functools

import jax
import jax.numpy as jnp
from jax.experimental import pallas as pl
from jax.experimental.pallas import tpu as pltpu

LANES = 128
MAX_BLOCK_ROWS = 2048      # 2048x128 f32 = 1 MiB per input tile (x2 in x2 buf)


def _round_up(v, m):
    return ((v + m - 1) // m) * m


def _sublane_multiple(dtype):
    # Packed-tile sublane multiple: 8 for 4-byte, 16 for 2-byte, 32 for 1-byte.
    return 8 * max(1, 4 // jnp.dtype(dtype).itemsize)


def _num_tensorcores():
    """TensorCores per chip: 1 on v5e/v6e, 2 on v4/v5p/v7x (conservative)."""
    try:
        info = pltpu.get_tpu_info()
        for attr in ("num_cores", "core_count", "num_tensorcores"):
            v = getattr(info, attr, None)
            if isinstance(v, int) and v > 0:
                return max(1, min(2, v))
    except Exception:
        pass
    try:
        kind = jax.devices()[0].device_kind.lower()
        if ("v4" in kind) or ("v5p" in kind) or ("v7" in kind):
            return 2
    except Exception:
        pass
    return 1


def _focal_elementwise(x, t, alpha, gamma):
    """Pure-JAX elementwise focal loss (fallback / reduction='none' path)."""
    x = x.astype(jnp.float32)
    t = t.astype(jnp.float32)
    bce = jnp.maximum(x, 0.0) - x * t + jnp.log1p(jnp.exp(-jnp.abs(x)))
    u = -jnp.expm1(-bce)                      # 1 - exp(-bce), no cancellation
    return alpha * (u ** gamma) * bce


def _focal_loss_kernel(x_ref, t_ref, out_ref, acc_ref, *, alpha, gamma,
                       n_valid, block_rows, blocks_per_chunk, scale,
                       assume_binary_targets):
    i = pl.program_id(1)

    @pl.when(i == 0)
    def _init():
        acc_ref[...] = jnp.zeros_like(acc_ref)

    x = x_ref[...].astype(jnp.float32)
    t = t_ref[...].astype(jnp.float32)

    # Numerically stable BCE-with-logits:  max(x,0) - x*t + log1p(exp(-|x|)).
    s = jnp.exp(-jnp.abs(x))                           # EUP exp (always finite)
    bce = jnp.maximum(x, 0.0) - x * t + jnp.log1p(s)   # EUP log1p

    if assume_binary_targets:
        # pt = p if t==1 else 1-p  with p = sigmoid(x); so
        #   u = 1 - pt = reciprocal(1+s) * select(correct-side, s, 1)
        # Avoids the second exp and the 1-exp(-bce) cancellation.
        r = pl.reciprocal(1.0 + s, approx=False)       # exact keeps rtol tight
        u = r * jnp.where((x >= 0.0) == (t >= 0.5), s, 1.0)
    else:
        u = -jnp.expm1(-bce)                           # general (soft) targets

    # Integer-gamma fast paths avoid the exp(gamma*log(u)) lowering.
    if gamma == 2.0:
        focal = u * u
    elif gamma == 1.0:
        focal = u
    elif gamma == 0.0:
        focal = jnp.ones_like(u)
    elif float(gamma).is_integer() and gamma > 0:
        focal = u ** int(gamma)
    else:
        focal = u ** jnp.float32(gamma)

    f_loss = focal * bce
    if alpha != 1.0:
        f_loss = alpha * f_loss

    # In-kernel tail mask: the grid may cover rows past the array (ragged last
    # block) and the last in-array row may hold <=127 pad elements.  Select
    # (not multiply) so any garbage/NaN in the out-of-bounds region is dropped.
    c = pl.program_id(0)
    row0 = (c * blocks_per_chunk + i) * block_rows         # logical, unclamped
    row_ids = jax.lax.broadcasted_iota(jnp.int32, (block_rows, LANES), 0)
    lane_ids = jax.lax.broadcasted_iota(jnp.int32, (block_rows, LANES), 1)
    elem_ids = (row0 + row_ids) * LANES + lane_ids
    f_loss = jnp.where(elem_ids < n_valid, f_loss, 0.0)

    # Per-lane/sublane partial sums on the VPU only (no per-step XLU reduce).
    acc_ref[...] += jnp.sum(f_loss.reshape(block_rows // 8, 8, LANES), axis=0)

    # Finish the reduction in-kernel: one XLU reduce per chunk, 1/n folded in.
    @pl.when(i == pl.num_programs(1) - 1)
    def _finish():
        total = jnp.sum(acc_ref[...], axis=1, keepdims=True)    # (8, 1)
        total = jnp.sum(total, axis=0, keepdims=True)           # (1, 1)
        out_ref[...] = (total * scale)[None]                    # (1, 1, 1)


def focal_loss(inputs, targets, alpha=1.0, gamma=2.0, reduction="mean",
               assume_binary_targets=True, min_pallas_elements=1 << 20):
    """Pallas TPU focal loss. Mirrors FocalLoss.forward."""
    # --- glue: replicate the squeeze / size-check logic (plain JAX) ---
    if inputs.ndim > targets.ndim:
        if inputs.shape[-1] == 1:
            inputs = inputs.reshape(inputs.shape[:-1])
    elif targets.ndim > inputs.ndim:
        if targets.shape[-1] == 1:
            targets = targets.reshape(targets.shape[:-1])
    if inputs.shape != targets.shape:
        raise ValueError(
            f"Target size ({targets.shape}) must be the same as "
            f"input size ({inputs.shape})")

    alpha = float(alpha)
    gamma = float(gamma)
    n = int(inputs.size)

    if reduction not in ("mean", "sum"):
        # Matches torch: any other reduction returns the unreduced loss.
        # TODO(synk): dedicated elementwise-output Pallas kernel for 'none'.
        return _focal_elementwise(inputs, targets, alpha, gamma)

    # Small inputs: kernel dispatch + trailing glue would dominate; let XLA
    # fuse the elementwise + reduce.
    if n == 0 or n < min_pallas_elements:
        f = _focal_elementwise(inputs, targets, alpha, gamma)
        return jnp.mean(f) if reduction == "mean" else jnp.sum(f)

    # --- lane-dense 2D view; no padding to block/chunk alignment ---
    x = inputs.reshape(-1)            # free reshape, native dtype streams as-is
    t = targets.reshape(-1)
    rows = pl.cdiv(n, LANES)
    pad = rows * LANES - n
    if pad:
        # Only when n % 128 != 0: pad <=127 elements so the (rows,128) reshape
        # is valid.  Values are irrelevant (masked in-kernel).
        x = jnp.pad(x, (0, pad))
        t = jnp.pad(t, (0, pad))
    x2 = x.reshape(rows, LANES)
    t2 = t.reshape(rows, LANES)

    num_chunks = _num_tensorcores()
    sub = max(_sublane_multiple(x2.dtype), _sublane_multiple(t2.dtype))
    rows_per_chunk = pl.cdiv(rows, num_chunks)
    block_rows = min(MAX_BLOCK_ROWS, _round_up(rows_per_chunk, sub))
    blocks_per_chunk = pl.cdiv(rows_per_chunk, block_rows)
    last_block = pl.cdiv(rows, block_rows) - 1   # last block with valid rows

    # Clamp the block index so no grid step DMAs a fully out-of-range block
    # (possible for tiny inputs with num_chunks=2); those steps are fully
    # masked in-kernel, so the redundant re-read is harmless.
    def tile_index(c, i):
        return (jnp.minimum(c * blocks_per_chunk + i, last_block), 0)

    tile_spec = pl.BlockSpec((block_rows, LANES), tile_index)
    out_spec = pl.BlockSpec((1, 1, 1), lambda c, i: (c, 0, 0))

    scale = (1.0 / n) if reduction == "mean" else 1.0
    kernel = functools.partial(
        _focal_loss_kernel, alpha=alpha, gamma=gamma, n_valid=n,
        block_rows=block_rows, blocks_per_chunk=blocks_per_chunk, scale=scale,
        assume_binary_targets=bool(assume_binary_targets))

    partials = pl.pallas_call(
        kernel,
        out_shape=jax.ShapeDtypeStruct((num_chunks, 1, 1), jnp.float32),
        grid_spec=pltpu.PrefetchScalarGridSpec(
            num_scalar_prefetch=0,
            grid=(num_chunks, blocks_per_chunk),
            in_specs=[tile_spec, tile_spec],
            out_specs=out_spec,
            scratch_shapes=[pltpu.VMEM((8, LANES), jnp.float32)],
        ),
        compiler_params=pltpu.CompilerParams(
            dimension_semantics=("parallel", "arbitrary"),
            vmem_limit_bytes=32 * 1024 * 1024),
    )(x2, t2)

    # num_chunks scalars; the 'mean' 1/n was already folded in per chunk.
    return jnp.sum(partials)


def _focal_loss_ref(inputs, targets, alpha=1.0, gamma=2.0):
    if inputs.ndim > targets.ndim and inputs.shape[-1] == 1:
        inputs = inputs.reshape(inputs.shape[:-1])
    x = inputs.astype(jnp.float32)
    t = targets.astype(jnp.float32)
    bce = jnp.maximum(x, 0.0) - x * t + jnp.log1p(jnp.exp(-jnp.abs(x)))
    pt = jnp.exp(-bce)
    return jnp.mean(alpha * (1.0 - pt) ** gamma * bce)


if __name__ == "__main__":
    key = jax.random.PRNGKey(0)
    k1, k2, k3, k4, k5, k6 = jax.random.split(key, 6)

    # Case 1: shapes as used by the source model: logits (N, 1), targets (N,).
    # N not 128-aligned -> exercises the tiny pad + in-kernel tail mask.
    N = 300
    logits = jax.random.normal(k1, (N, 1), dtype=jnp.float32) * 2.0
    targets = jax.random.bernoulli(k2, 0.3, (N,)).astype(jnp.float32)
    loss = jax.block_until_ready(
        focal_loss(logits, targets, alpha=1.0, gamma=2.0, reduction="mean",
                   min_pallas_elements=0))
    ref = _focal_loss_ref(logits, targets)
    assert jnp.allclose(loss, ref, rtol=2e-5, atol=1e-6), (loss, ref)

    # Case 2: bf16 inputs (native-dtype streaming, 16-row sublane alignment).
    M = 4133
    logits_bf = (jax.random.normal(k3, (M,), dtype=jnp.float32) * 3.0
                 ).astype(jnp.bfloat16)
    targets_bf = jax.random.bernoulli(k4, 0.5, (M,)).astype(jnp.bfloat16)
    loss2 = jax.block_until_ready(
        focal_loss(logits_bf, targets_bf, min_pallas_elements=0))
    ref2 = _focal_loss_ref(logits_bf, targets_bf)
    assert jnp.allclose(loss2, ref2, rtol=1e-4, atol=1e-6), (loss2, ref2)

    # Case 3: 128-aligned size -> fully pad-free path; 'sum' reduction and the
    # general (non-binary-assuming) formulation.
    P = 2560
    logits3 = jax.random.normal(k5, (P,), dtype=jnp.float32)
    targets3 = jax.random.bernoulli(k6, 0.4, (P,)).astype(jnp.float32)
    loss3 = jax.block_until_ready(
        focal_loss(logits3, targets3, alpha=0.25, gamma=2.0, reduction="sum",
                   assume_binary_targets=False, min_pallas_elements=0))
    ref3 = jnp.sum(_focal_elementwise(logits3, targets3, 0.25, 2.0))
    assert jnp.allclose(loss3, ref3, rtol=2e-5, atol=1e-5), (loss3, ref3)

    # Case 4: default small-input fallback (pure-JAX path) agrees too.
    loss4 = jax.block_until_ready(focal_loss(logits, targets))
    assert jnp.allclose(loss4, ref, rtol=2e-5, atol=1e-6), (loss4, ref)

    print("KERNEL_OK")
</pallas_src>

<mosaic_0001>
module attributes {stable_mosaic.version = 11 : i64} {
  func.func @_focal_loss_kernel(%arg0: i32, %arg1: i32, %arg2: memref<8x128xf32, #tpu.memory_space<vmem>>, %arg3: memref<8x128xf32, #tpu.memory_space<vmem>>, %arg4: memref<1x1x1xf32, #tpu.memory_space<vmem>>, %arg5: memref<8x128xf32, #tpu.memory_space<vmem>>) attributes {dimension_semantics = [#tpu.dimension_semantics<parallel>, #tpu.dimension_semantics<arbitrary>], iteration_bounds = array<i64: 1, 1>, scalar_prefetch = 0 : i64, scratch_operands = 1 : i64, tpu.core_type = #tpu.core_type<tc>, window_params = [{transform_indices = @transform_0, window_bounds = array<i64: 8, 128>}, {transform_indices = @transform_1, window_bounds = array<i64: 8, 128>}, {transform_indices = @transform_2, window_bounds = array<i64: 1, 1, 1>}]} {
    %c0_i32 = arith.constant 0 : i32
    %0 = arith.cmpi eq, %arg1, %c0_i32 : i32
    %1 = arith.extui %0 : i1 to i32
    %c0_i32_0 = arith.constant 0 : i32
    %2 = arith.cmpi ne, %1, %c0_i32_0 : i32
    scf.if %2 {
      %cst_18 = arith.constant 0.000000e+00 : f32
      %51 = vector.broadcast %cst_18 : f32 to vector<8x128xf32>
      %c0_19 = arith.constant 0 : index
      %c0_20 = arith.constant 0 : index
      %52 = vector.load %arg5[%c0_19, %c0_20] : memref<8x128xf32, #tpu.memory_space<vmem>>, vector<8x128xf32>
      tpu.vector_store %arg5[%c0_19, %c0_20], %51 {strides = array<i32>} : memref<8x128xf32, #tpu.memory_space<vmem>>, vector<8x128xf32>,
    } else {
    }
    %c0 = arith.constant 0 : index
    %c0_1 = arith.constant 0 : index
    %3 = vector.load %arg2[%c0, %c0_1] : memref<8x128xf32, #tpu.memory_space<vmem>>, vector<8x128xf32>
    %c0_2 = arith.constant 0 : index
    %c0_3 = arith.constant 0 : index
    %4 = vector.load %arg3[%c0_2, %c0_3] : memref<8x128xf32, #tpu.memory_space<vmem>>, vector<8x128xf32>
    %5 = math.absf %3 : vector<8x128xf32>
    %cst = arith.constant 0.000000e+00 : f32
    %6 = vector.broadcast %cst : f32 to vector<8x128xf32>
    %7 = arith.subf %6, %5 : vector<8x128xf32>
    %8 = math.exp %7 : vector<8x128xf32>
    %cst_4 = arith.constant 0.000000e+00 : f32
    %9 = vector.broadcast %cst_4 : f32 to vector<8x128xf32>
    %10 = arith.maximumf %3, %9 : vector<8x128xf32>
    %11 = arith.mulf %3, %4 : vector<8x128xf32>
    %12 = arith.subf %10, %11 : vector<8x128xf32>
    %13 = math.log1p %8 : vector<8x128xf32>
    %14 = arith.addf %12, %13 : vector<8x128xf32>
    %cst_5 = arith.constant 1.000000e+00 : f32
    %15 = vector.broadcast %cst_5 : f32 to vector<8x128xf32>
    %16 = arith.addf %15, %8 : vector<8x128xf32>
    %17 = tpu.reciprocal %16 : vector<8x128xf32> -> vector<8x128xf32>
    %cst_6 = arith.constant 0.000000e+00 : f32
    %18 = vector.broadcast %cst_6 : f32 to vector<8x128xf32>
    %19 = arith.cmpf oge, %3, %18 : vector<8x128xf32>
    %cst_7 = arith.constant 5.000000e-01 : f32
    %20 = vector.broadcast %cst_7 : f32 to vector<8x128xf32>
    %21 = arith.cmpf oge, %4, %20 : vector<8x128xf32>
    %22 = arith.xori %19, %21 : vector<8x128xi1>
    %cst_8 = arith.constant dense<true> : vector<8x128xi1>
    %23 = arith.xori %22, %cst_8 : vector<8x128xi1>
    %cst_9 = arith.constant 1.000000e+00 : f32
    %24 = vector.broadcast %cst_9 : f32 to vector<8x128xf32>
    %25 = arith.select %23, %8, %24 : vector<8x128xi1>, vector<8x128xf32>
    %26 = arith.mulf %17, %25 : vector<8x128xf32>
    %27 = arith.mulf %26, %26 : vector<8x128xf32>
    %28 = arith.mulf %27, %14 : vector<8x128xf32>
    %c1_i32 = arith.constant 1 : i32
    %29 = arith.muli %arg0, %c1_i32 : i32
    %30 = arith.addi %29, %arg1 : i32
    %c8_i32 = arith.constant 8 : i32
    %31 = arith.muli %30, %c8_i32 : i32
    %32 = tpu.iota {dimensions = array<i32: 0>} : vector<8x128xi32>
    %33 = tpu.iota {dimensions = array<i32: 1>} : vector<8x128xi32>
    %34 = vector.broadcast %31 : i32 to vector<8x128xi32>
    %35 = arith.addi %34, %32 : vector<8x128xi32>
    %c128_i32 = arith.constant 128 : i32
    %36 = vector.broadcast %c128_i32 : i32 to vector<8x128xi32>
    %37 = arith.muli %35, %36 : vector<8x128xi32>
    %38 = arith.addi %37, %33 : vector<8x128xi32>
    %c300_i32 = arith.constant 300 : i32
    %39 = vector.broadcast %c300_i32 : i32 to vector<8x128xi32>
    %40 = arith.cmpi slt, %38, %39 : vector<8x128xi32>
    %cst_10 = arith.constant 0.000000e+00 : f32
    %41 = vector.broadcast %cst_10 : f32 to vector<8x128xf32>
    %42 = arith.select %40, %28, %41 : vector<8x128xi1>, vector<8x128xf32>
    %c0_11 = arith.constant 0 : index
    %c0_12 = arith.constant 0 : index
    %43 = vector.load %arg5[%c0_11, %c0_12] : memref<8x128xf32, #tpu.memory_space<vmem>>, vector<8x128xf32>
    %44 = vector.shape_cast %42 : vector<8x128xf32> to vector<1x8x128xf32>
    %cst_13 = arith.constant dense<0.000000e+00> : vector<8x128xf32>
    %45 = vector.multi_reduction <add>, %44, %cst_13 [0] : vector<1x8x128xf32> to vector<8x128xf32>
    %46 = arith.addf %43, %45 : vector<8x128xf32>
    %c0_14 = arith.constant 0 : index
    %c0_15 = arith.constant 0 : index
    %47 = vector.load %arg5[%c0_14, %c0_15] : memref<8x128xf32, #tpu.memory_space<vmem>>, vector<8x128xf32>
    tpu.vector_store %arg5[%c0_14, %c0_15], %46 {strides = array<i32>} : memref<8x128xf32, #tpu.memory_space<vmem>>, vector<8x128xf32>,
    %c0_i32_16 = arith.constant 0 : i32
    %48 = arith.cmpi eq, %arg1, %c0_i32_16 : i32
    %49 = arith.extui %48 : i1 to i32
    %c0_i32_17 = arith.constant 0 : i32
    %50 = arith.cmpi ne, %49, %c0_i32_17 : i32
    scf.if %50 {
      %c0_18 = arith.constant 0 : index
      %c0_19 = arith.constant 0 : index
      %51 = vector.load %arg5[%c0_18, %c0_19] : memref<8x128xf32, #tpu.memory_space<vmem>>, vector<8x128xf32>
      %cst_20 = arith.constant dense<0.000000e+00> : vector<8xf32>
      %52 = vector.multi_reduction <add>, %51, %cst_20 [1] : vector<8x128xf32> to vector<8xf32>
      %53 = vector.shape_cast %52 : vector<8xf32> to vector<8x1xf32>
      %cst_21 = arith.constant dense<0.000000e+00> : vector<1xf32>
      %54 = vector.multi_reduction <add>, %53, %cst_21 [0] : vector<8x1xf32> to vector<1xf32>
      %55 = vector.shape_cast %54 : vector<1xf32> to vector<1x1xf32>
      %cst_22 = arith.constant 0.00333333341 : f32
      %56 = vector.broadcast %cst_22 : f32 to vector<1x1xf32>
      %57 = arith.mulf %55, %56 : vector<1x1xf32>
      %58 = vector.shape_cast %57 : vector<1x1xf32> to vector<1x1x1xf32>
      %c0_23 = arith.constant 0 : index
      %c0_24 = arith.constant 0 : index
      %c0_25 = arith.constant 0 : index
      %59 = vector.load %arg4[%c0_23, %c0_24, %c0_25] : memref<1x1x1xf32, #tpu.memory_space<vmem>>, vector<1x1x1xf32>
      tpu.vector_store %arg4[%c0_23, %c0_24, %c0_25], %58 {strides = array<i32>} : memref<1x1x1xf32, #tpu.memory_space<vmem>>, vector<1x1x1xf32>,
    } else {
    }
    return
  }
  func.func @transform_0(%arg0: i32, %arg1: i32) -> (i32, i32) {
    %c1_i32 = arith.constant 1 : i32
    %0 = arith.muli %arg0, %c1_i32 : i32
    %1 = arith.addi %0, %arg1 : i32
    %c0_i32 = arith.constant 0 : i32
    %2 = arith.minsi %1, %c0_i32 : i32
    %c0_i32_0 = arith.constant 0 : i32
    %c0_i32_1 = arith.constant 0 : i32
    return %2, %c0_i32_0 : i32, i32
  }
  func.func @transform_1(%arg0: i32, %arg1: i32) -> (i32, i32) {
    %c1_i32 = arith.constant 1 : i32
    %0 = arith.muli %arg0, %c1_i32 : i32
    %1 = arith.addi %0, %arg1 : i32
    %c0_i32 = arith.constant 0 : i32
    %2 = arith.minsi %1, %c0_i32 : i32
    %c0_i32_0 = arith.constant 0 : i32
    %c0_i32_1 = arith.constant 0 : i32
    return %2, %c0_i32_0 : i32, i32
  }
  func.func @transform_2(%arg0: i32, %arg1: i32) -> (i32, i32, i32) {
    %c0_i32 = arith.constant 0 : i32
    %c0_i32_0 = arith.constant 0 : i32
    %c0_i32_1 = arith.constant 0 : i32
    return %arg0, %c0_i32, %c0_i32_0 : i32, i32, i32
  }
}

</mosaic_0001>

<bundles_post_ra>
// kernel: tpu_custom_call.1
= control target key start
LH: loop header
LB: loop body
LE: loop exit
PB: predicated region body
PF: predicated region fallthrough
CT: control target
= control target key end

     0   :  { %7 = vsyncpa [#allocation4], 0  ;;  %s304_s0 = inlined_call_operand.hbm [shape: f32[3,128], index: 0, kind: input, shape index: {}]   ;;  %s305_s1 = inlined_call_operand.hbm [shape: f32[3,128], index: 1, kind: input, shape index: {}]   ;;  %s306_s2 = inlined_call_operand.hbm [shape: f32[1,1,1], index: 2, kind: output, shape index: {}]  }
   0x1   :  { %8 = vsyncpa [#allocation7], 0 }
   0x2   :  { %9 = vsyncpa [#allocation5], 0 }
   0x3   :  { %20 = vsyncadd [#allocation4], 64  ;;  %s25_s11 = sshll.u32 %s304_s0, 4  ;;  %s268_s12 = smov [#allocation3]   ;;  %s26_s11 = int_to_ptr.hbm [resolvable:$true] %s25_s11 }
   0x4   :  { %s27_s13 = sshll.u32 %s268_s12, 4  ;;  %s269_s14 = smov 64   ;;  %s28_s13 = int_to_ptr.vmem [resolvable:$true] %s27_s13 }
   0x5   :  { %s270_s15 = smov 4  }
   0x6   :  { %33 = dma.hbm_to_vmem [thread:$0]  %s26_s11, 64, %s28_s13, [#allocation4], %s269_s14, %s269_s14, %s270_s15  }
   0x7   :  { %44 = vsyncadd [#allocation7], 64  ;;  %s49_s18 = sshll.u32 %s305_s1, 4  ;;  %s271_s19 = smov [#allocation6]   ;;  %s50_s18 = int_to_ptr.hbm [resolvable:$true] %s49_s18 }
   0x8   :  { %s51_s20 = sshll.u32 %s271_s19, 4  ;;  %s52_s20 = int_to_ptr.vmem [resolvable:$true] %s51_s20 }
   0x9   :  { %57 = dma.hbm_to_vmem [thread:$0]  %s50_s18, 64, %s52_s20, [#allocation7], %s269_s14, %s269_s14, %s270_s15  }
   0xa   :  { %262 = dma.done.wait [#allocation4], 128  }
   0xb   :  { %263 = vsyncadd [#allocation4], 4294967168 }
   0xc   :  { %264 = dma.done.wait [#allocation7], 128  }
   0xd   :  { %265 = vsyncadd [#allocation7], 4294967168  ;;  %v83_v0 = vld [vmem:[#allocation3] sm:$0xff]  ;;  %v84_v6 = vld [vmem:[#allocation6] sm:$0xff]  ;;  %v127_v8 = vlaneseq  ;;  %vm272_vm6 = vmmov 1   ;;  %s273_s0 = smov [#allocation8]  }
   0xe   :  { %v85_v1 = vand.u32 2147483647, %v83_v0  ;;  %vm117_vm0 = vcmp.ge.f32.partialorder %v83_v0, 0.0  ;;  %vm118_vm1 = vcmp.ge.f32.partialorder %v84_v6, 0.5  ;;  %v89_v14 = vmax.f32 %v83_v0, 0.0  ;;  %s161_s1 = sshll.u32 %s273_s0, 4  ;;  %s162_s1 = int_to_ptr.vmem [resolvable:$true] %s161_s1 }
   0xf   :  { %v90_v15 = vmul.f32 %v84_v6, %v83_v0  ;;  %vm119_vm2 = vmxor %vm117_vm0, %vm118_vm1  ;;  %v128_v17 = vshrl.u32 %v127_v8, 7  ;;  %v130_v25 = vand.u32 127, %v127_v8  ;;  %s163_s23 = sshll.u32 %s306_s2, 4  ;;  %vm154_vm11 = vcmask 0   ;;  %s164_s23 = int_to_ptr.hbm [resolvable:$true] %s163_s23 }
  0x10   :  { %v86_v2 = vsub.f32 0.0, %v85_v1  ;;  %vm120_vm7 = vmxor %vm119_vm2, %vm272_vm6 }
  0x11   :  { %v133_v26 = vmul.u32 128, %v128_v17  ;;  %v91_v27 = vsub.f32 %v89_v14, %v90_v15 }
  0x12   :  { %v87_v3 = vmul.f32 1.442695, %v86_v2 }
  0x13   :  { %v134_v33 = vadd.s32 %v133_v26, %v130_v25 }
  0x14   :  { %184 = vpow2.f32 %v87_v3 }
  0x15   :  { %vm135_vm10 = vcmp.lt.s32.totalorder %v134_v33, 300 }
  0x1a   :  { %v185_v4 = vpop.eup %184 }
  0x1b   :  { %v92_v5 = vadd.f32 1.0, %v185_v4  ;;  %v95_v7 = vmul.f32 -0.5, %v185_v4  ;;  %v98_v12 = vand.u32 2147483647, %v185_v4  ;;  %v121_v30 = vsel %vm120_vm7, %v185_v4, 1.0 }
  0x1d   :  { %186 = vrcp.f32 %v92_v5  ;;  %v96_v10 = vadd.f32 1.0, %v95_v7  ;;  %v114_v16 = vand.u32 2147483648, %v92_v5  ;;  %vm108_vm3 = vweird.f32 %v92_v5 }
  0x1e   :  { %188 = vlog2.f32 %v92_v5  ;;  %v112_v19 = vand.u32 2147483647, %v92_v5  ;;  %vm295_vm5 = vcmp.lt.f32.partialorder %v98_v12, 0.0004427343 }
  0x1f   :  { %v97_v21 = vmul.f32 %v185_v4, %v96_v10  ;;  %v115_v24 = vor.u32 1.1754944e-38, %v114_v16 }
  0x20   :  { %vm113_vm9 = vcmp.eq.f32.partialorder %v112_v19, 8.507059e+37 }
  0x23   :  { %v187_v9 = vpop.eup %186 }
  0x24   :  { %v189_v11 = vpop.eup %188  ;;  %v104_v13 = vmul.f32 %v187_v9, %v92_v5  ;;  %vm109_vm4 = vweird.f32 %v187_v9 }
  0x25   :  { %v94_v20 = vmul.f32 0.6931472, %v189_v11  ;;  %vm110_vm8 = vmor %vm108_vm3, %vm109_vm4 }
  0x26   :  { %v105_v18 = vsub.f32 1.0, %v104_v13 }
  0x27   :  { %v100_v29 = vsel %vm295_vm5, %v97_v21, %v94_v20 }
  0x28   :  { %v106_v23 = vmul.f32 %v187_v9, %v105_v18  ;;  %v101_v34 = vadd.f32 %v100_v29, %v91_v27 }
  0x2a   :  { %v107_v28 = vadd.f32 %v187_v9, %v106_v23 }
  0x2c   :  { %v111_v31 = vsel %vm110_vm8, %v187_v9, %v107_v28 }
  0x2d   :  { %v116_v32 = vsel %vm113_vm9, %v115_v24, %v111_v31 }
  0x2e   :  { %v122_v35 = vmul.f32 %v121_v30, %v116_v32 }
  0x30   :  { %v123_v36 = vmul.f32 %v122_v35, %v122_v35 }
  0x32   :  { %v124_v37 = vmul.f32 %v123_v36, %v101_v34 }
  0x34   :  { %v136_v38 = vsel %vm135_vm10, %v124_v37, 0.0 }
  0x35   :  { %145 = vadd.xlane.f32.xlu0 %v136_v38 }
  0xa8   :  { %v146_v39 = vpop.xlane.xlu0 %145 }
  0xa9   :  { %v147_v40 = vrot.slane %v146_v39, 4 }
  0xab   :  { %v148_v41 = vadd.f32 %v147_v40, %v146_v39 }
  0xad   :  { %v149_v42 = vrot.slane %v148_v41, 2 }
  0xaf   :  { %v150_v43 = vadd.f32 %v149_v42, %v148_v41 }
  0xb1   :  { %v151_v44 = vrot.slane %v150_v43, 1 }
  0xb3   :  { %v152_v45 = vadd.f32 %v151_v44, %v150_v43 }
  0xb5   :  { %v153_v46 = vmul.f32 0.0033333334, %v152_v45 }
  0xb7   :  { %155 = vst.msk [vmem:[#allocation8] sm:$0x1] %vm154_vm11, %v153_v46 }
  0xb8   :  { %166 = dma.vmem_to_hbm [thread:$0]  %s162_s1, 16, %s164_s23, [#allocation5]  }
  0xb9   :  { %266 = dma.done.wait [#allocation5], 16  }
  0xba   :  { %267 = vsyncadd [#allocation5], 4294967280 }
  0xbb   :  { %171 = vsyncpa [#allocation4], 1 }
  0xbc   :  { %172 = vsyncpa [#allocation7], 1 }
  0xbd   :  { %173 = vsyncpa [#allocation5], 1 }

</bundles_post_ra>
